<compile_context>
chip_gen: v7x
topology: tpu7x:2x2x1
jax: 0.10.0
libtpu: 0.0.40
codegen_flags: <defaults>
</compile_context>

<pallas_src>
import jax
import jax.numpy as jnp
from jax.experimental import pallas as pl
from jax.experimental.pallas import tpu as pltpu


def _gext_kernel(ids_ref, expr_ref, table_ref, out_ref):
    """One TN-row slab per grid step.

    ids_ref  : [TN, 1]  int32, VMEM block
    expr_ref : [TN, 1]  f32,   VMEM block
    table_ref: [V,  H]  embedding table, VMEM-resident (constant index_map)
    out_ref  : [TN, H]  VMEM block (lane-dense: H on lanes)
    """
    tn = ids_ref.shape[0]
    v = table_ref.shape[0]

    ids = ids_ref[...]                                              # [TN, 1]
    iota_v = jax.lax.broadcasted_iota(jnp.int32, (tn, v), 1)        # [TN, V]
    one_hot = (ids == iota_v).astype(table_ref.dtype)               # [TN, V]

    # Exact row selection via MXU. For f32 tables force full precision so the
    # gathered rows match the table bit-for-bit; bf16 tables are exact at
    # default (single-pass) precision.
    precision = (jax.lax.Precision.HIGHEST
                 if table_ref.dtype == jnp.float32
                 else jax.lax.Precision.DEFAULT)
    rows = jnp.dot(one_hot, table_ref[...],
                   precision=precision,
                   preferred_element_type=jnp.float32)              # [TN, H] f32

    scale = expr_ref[...].astype(jnp.float32)                       # [TN, 1]
    out_ref[...] = (scale * rows).astype(out_ref.dtype)


def _vmem_capacity_bytes():
    """Physical VMEM per TensorCore; conservative fallback if query fails."""
    try:
        info = pltpu.get_tpu_info()
        cap = getattr(info, "vmem_capacity_bytes", None)
        if cap:
            return int(cap)
    except Exception:
        pass
    return 64 << 20  # v7x physical VMEM (smallest of the target generations)


def gext_embeddings(gene_expression, gene_input_ids, emb_table, landmark_genes,
                    bool_masked_pos=None, group_mtx=None, mask_id=1,
                    *, block_rows=512, out_dtype=None):
    """Pallas forward of GEXTEmbeddings (mirrors the PyTorch module)."""
    del bool_masked_pos, group_mtx, mask_id  # unused by the reference forward

    V, H = emb_table.shape
    if out_dtype is None:
        out_dtype = jnp.promote_types(gene_expression.dtype, emb_table.dtype)

    expr = gene_expression[:, :landmark_genes].astype(jnp.float32)       # [B, L]
    ids = jnp.clip(gene_input_ids[:, :landmark_genes].astype(jnp.int32),
                   0, V - 1)                                             # [B, L]
    B, L = expr.shape
    N = B * L

    emb_itemsize = jnp.dtype(emb_table.dtype).itemsize
    out_itemsize = jnp.dtype(out_dtype).itemsize

    # --- Generation-aware tile sizing -------------------------------------
    vmem_cap = _vmem_capacity_bytes()
    TN = min(block_rows, pl.cdiv(N, 8) * 8)   # rows per grid step, multiple of 8
    TN = max(8, (TN // 8) * 8)

    def _footprint(tn):
        table_bytes = V * H * emb_itemsize                # resident table
        out_bytes = 2 * tn * H * out_itemsize             # double-buffered out
        small_bytes = 2 * tn * (4 + 4)                    # ids + expr blocks
        onehot_bytes = tn * V * 4                         # matmul operand
        return table_bytes + out_bytes + small_bytes + onehot_bytes

    while TN > 8 and _footprint(TN) > int(0.8 * vmem_cap):
        TN = max(8, (TN // 2 // 8) * 8)

    Np = pl.cdiv(N, TN) * TN
    ids_flat = ids.reshape(N, 1)
    expr_flat = expr.reshape(N, 1)
    if Np != N:
        # Pad with id 0 (valid row) and expression 0; sliced off below.
        ids_flat = jnp.pad(ids_flat, ((0, Np - N), (0, 0)))
        expr_flat = jnp.pad(expr_flat, ((0, Np - N), (0, 0)))

    # 1-D parallel grid over row slabs (realistic B*L gives many blocks, so
    # v7x's two TensorCores both get work).
    grid = (Np // TN,)

    # Advisory cost: table read once, lane-dense output writeback dominates.
    cost = pl.CostEstimate(
        flops=2 * Np * V * H + Np * H,
        transcendentals=0,
        bytes_accessed=V * H * emb_itemsize + Np * H * out_itemsize + Np * 8,
    )

    vmem_limit = int(min(max(_footprint(TN) + (16 << 20), 32 << 20), vmem_cap))

    out = pl.pallas_call(
        _gext_kernel,
        out_shape=jax.ShapeDtypeStruct((Np, H), out_dtype),
        grid=grid,
        in_specs=[
            pl.BlockSpec((TN, 1), lambda i: (i, 0)),        # gene ids
            pl.BlockSpec((TN, 1), lambda i: (i, 0)),        # expression
            pl.BlockSpec((V, H), lambda i: (0, 0)),         # resident emb table
        ],
        out_specs=pl.BlockSpec((TN, H), lambda i: (i, 0)),
        compiler_params=pltpu.CompilerParams(
            dimension_semantics=("parallel",),
            vmem_limit_bytes=vmem_limit,
        ),
        cost_estimate=cost,
    )(ids_flat, expr_flat, emb_table)

    if Np != N:
        out = out[:N]
    return out.reshape(B, L, H)


if __name__ == "__main__":
    # Small synthetic config (H kept at a lane-dense multiple of 128).
    vocab_size = 64
    hidden_size = 128
    landmark_genes = 16
    total_genes = 20       # inputs carry more genes; forward slices to landmark
    batch = 10

    key = jax.random.PRNGKey(0)
    k_emb, k_expr, k_ids = jax.random.split(key, 3)

    # Deterministic "parameters" (nn.Embedding weight).
    emb_table = jax.random.normal(k_emb, (vocab_size, hidden_size), jnp.float32)

    # Deterministic example inputs.
    gene_expression = jax.random.normal(k_expr, (batch, total_genes), jnp.float32)
    gene_input_ids = jax.random.randint(k_ids, (batch, total_genes), 0, vocab_size,
                                        dtype=jnp.int32)
    bool_masked_pos = jnp.zeros((batch, landmark_genes), jnp.bool_)        # unused
    group_mtx = jnp.zeros((landmark_genes, landmark_genes), jnp.float32)   # unused

    out = gext_embeddings(gene_expression, gene_input_ids, emb_table,
                          landmark_genes, bool_masked_pos, group_mtx)
    out = jax.block_until_ready(out)

    # Pure-JAX reference check.
    expr = gene_expression[:, :landmark_genes]
    ids = gene_input_ids[:, :landmark_genes]
    ref = expr[:, :, None] * emb_table[ids]
    assert out.shape == (batch, landmark_genes, hidden_size)
    assert jnp.allclose(out, ref, atol=1e-5, rtol=1e-5)

    print("KERNEL_OK")
</pallas_src>

<mosaic_0001>
module attributes {stable_mosaic.version = 11 : i64} {
  func.func @_gext_kernel(%arg0: i32, %arg1: memref<160x1xi32, #tpu.memory_space<vmem>>, %arg2: memref<160x1xf32, #tpu.memory_space<vmem>>, %arg3: memref<64x128xf32, #tpu.memory_space<vmem>>, %arg4: memref<160x128xf32, #tpu.memory_space<vmem>>) attributes {dimension_semantics = [#tpu.dimension_semantics<parallel>], iteration_bounds = array<i64: 1>, scalar_prefetch = 0 : i64, scratch_operands = 0 : i64, tpu.core_type = #tpu.core_type<tc>, window_params = [{transform_indices = @transform_0, window_bounds = array<i64: 160, 1>}, {transform_indices = @transform_1, window_bounds = array<i64: 160, 1>}, {pipeline_mode = #tpu.pipeline_mode<synchronous>, transform_indices = @transform_2, window_bounds = array<i64: 64, 128>}, {transform_indices = @transform_3, window_bounds = array<i64: 160, 128>}]} {
    %c0 = arith.constant 0 : index
    %c0_0 = arith.constant 0 : index
    %0 = vector.load %arg1[%c0, %c0_0] : memref<160x1xi32, #tpu.memory_space<vmem>>, vector<160x1xi32>
    %1 = tpu.iota {dimensions = array<i32: 1>} : vector<160x64xi32>
    %2 = vector.broadcast %0 : vector<160x1xi32> to vector<160x64xi32>
    %3 = arith.cmpi eq, %2, %1 : vector<160x64xi32>
    %4 = arith.extui %3 : vector<160x64xi1> to vector<160x64xi32>
    %5 = arith.sitofp %4 : vector<160x64xi32> to vector<160x64xf32>
    %c0_1 = arith.constant 0 : index
    %c0_2 = arith.constant 0 : index
    %6 = vector.load %arg3[%c0_1, %c0_2] : memref<64x128xf32, #tpu.memory_space<vmem>>, vector<64x128xf32>
    %cst = arith.constant dense<0.000000e+00> : vector<160x128xf32>
    %7 = tpu.matmul %5, %6, %cst {dimension_numbers = #tpu.dot_dimension_numbers<[1], [0], [0], [1], [0, 0, 1, 1], [], []>, precision = #tpu.contract_precision<fp32>} : vector<160x64xf32>, vector<64x128xf32>, vector<160x128xf32> -> vector<160x128xf32>
    %c0_3 = arith.constant 0 : index
    %c0_4 = arith.constant 0 : index
    %8 = vector.load %arg2[%c0_3, %c0_4] : memref<160x1xf32, #tpu.memory_space<vmem>>, vector<160x1xf32>
    %9 = vector.broadcast %8 : vector<160x1xf32> to vector<160x128xf32>
    %10 = arith.mulf %9, %7 : vector<160x128xf32>
    %c0_5 = arith.constant 0 : index
    %c0_6 = arith.constant 0 : index
    %11 = vector.load %arg4[%c0_5, %c0_6] : memref<160x128xf32, #tpu.memory_space<vmem>>, vector<160x128xf32>
    tpu.vector_store %arg4[%c0_5, %c0_6], %10 {strides = array<i32>} : memref<160x128xf32, #tpu.memory_space<vmem>>, vector<160x128xf32>,
    return
  }
  func.func @transform_0(%arg0: i32) -> (i32, i32) {
    %c0_i32 = arith.constant 0 : i32
    %c0_i32_0 = arith.constant 0 : i32
    return %arg0, %c0_i32 : i32, i32
  }
  func.func @transform_1(%arg0: i32) -> (i32, i32) {
    %c0_i32 = arith.constant 0 : i32
    %c0_i32_0 = arith.constant 0 : i32
    return %arg0, %c0_i32 : i32, i32
  }
  func.func @transform_2(%arg0: i32) -> (i32, i32) {
    %c0_i32 = arith.constant 0 : i32
    %c0_i32_0 = arith.constant 0 : i32
    %c0_i32_1 = arith.constant 0 : i32
    return %c0_i32, %c0_i32_0 : i32, i32
  }
  func.func @transform_3(%arg0: i32) -> (i32, i32) {
    %c0_i32 = arith.constant 0 : i32
    %c0_i32_0 = arith.constant 0 : i32
    return %arg0, %c0_i32 : i32, i32
  }
}

</mosaic_0001>

<bundles_post_ra>
// kernel: tpu_custom_call.1
= control target key start
LH: loop header
LB: loop body
LE: loop exit
PB: predicated region body
PF: predicated region fallthrough
CT: control target
= control target key end

     0   :  { %v2507_v2 = vmov 0   ;;  %s3162_s0 = inlined_call_operand.vmem [shape: s32[160,1], index: 0, kind: input, shape index: {}]   ;;  %s3163_s1 = inlined_call_operand.vmem [shape: f32[160,1], index: 1, kind: input, shape index: {}]   ;;  %s3164_s2 = inlined_call_operand.vmem [shape: f32[64,128], index: 2, kind: input, shape index: {}]   ;;  %s3165_s3 = inlined_call_operand.hbm [shape: f32[160,128], index: 3, kind: output, shape index: {}]  }
   0x1   :  { %v17_v0 = vld [vmem:[%s3162_s0 + $0x10] sm:$0xff]  ;;  %v15_v1 = vld [vmem:[%s3162_s0] sm:$0xff]  ;;  %2482 = vset.pattern.permute.xlu1 %v2507_v2  ;;  %2481 = vset.pattern.permute.xlu0 %v2507_v2  ;;  %v18_v3 = vld [vmem:[%s3162_s0 + $0x18] sm:$0xff] }
   0x2   :  { %44 = vperm.xlu1 %2482, %v17_v0   ;;  %38 = vperm.xlu0 %2481, %v15_v1   ;;  %v16_v4 = vld [vmem:[%s3162_s0 + $0x8] sm:$0xff]  ;;  %v19_v6 = vld [vmem:[%s3162_s0 + $0x20] sm:$0xff]  ;;  %v22_v7 = vld [vmem:[%s3162_s0 + $0x38] sm:$0xff] }
   0x3   :  { %v20_v5 = vld [vmem:[%s3162_s0 + $0x28] sm:$0xff]  ;;  %v21_v8 = vld [vmem:[%s3162_s0 + $0x30] sm:$0xff]  ;;  %v157_v9 = vld [vmem:[%s3164_s2] sm:$0xff] }
   0x4   :  { %v158_v10 = vld [vmem:[%s3164_s2 + $0x8] sm:$0xff]  ;;  %v227_v11 = vand.u32 4294901760, %v157_v9  ;;  %v159_v13 = vld [vmem:[%s3164_s2 + $0x10] sm:$0xff]  ;;  %v160_v14 = vld [vmem:[%s3164_s2 + $0x18] sm:$0xff] }
   0x5   :  { %v230_v12 = vand.u32 4294901760, %v158_v10  ;;  %v2571_v15 = vld [vmem:[%s3164_s2 + $0x20] sm:$0xff]  ;;  %v24_v16 = vld [vmem:[%s3162_s0 + $0x48] sm:$0xff]  ;;  %v233_v18 = vand.u32 4294901760, %v159_v13  ;;  %v236_v19 = vand.u32 4294901760, %v160_v14 }
   0x6   :  { %47 = vperm.xlu1 %2482, %v18_v3   ;;  %41 = vperm.xlu0 %2481, %v16_v4   ;;  %v23_v17 = vld [vmem:[%s3162_s0 + $0x40] sm:$0xff]  ;;  %v2582_v20 = vld [vmem:[%s3164_s2 + $0x28] sm:$0xff]  ;;  %v239_v22 = vand.u32 4294901760, %v2571_v15 }
   0x7   :  { %v2584_v21 = vpack.c.bf16 %v230_v12, %v227_v11 }
   0xa   :  { %53 = vperm.xlu1 %2482, %v20_v5   ;;  %50 = vperm.xlu0 %2481, %v19_v6  }
   0xe   :  { %59 = vperm.xlu1 %2482, %v22_v7   ;;  %56 = vperm.xlu0 %2481, %v21_v8  }
   0xf   :  { %8 = vsyncpa [#allocation3], 0  ;;  %v2587_v23 = vpack.c.bf16 %v236_v19, %v233_v18  ;;  %v242_v24 = vand.u32 4294901760, %v2582_v20  ;;  %v2593_v25 = vld [vmem:[%s3164_s2 + $0x30] sm:$0xff]  ;;  %v2595_v26 = vsub.f32 %v157_v9, %v227_v11  ;;  %v2597_v27 = vsub.f32 %v158_v10, %v230_v12  ;;  %v2602_v28 = vld [vmem:[%s3164_s2 + $0x38] sm:$0xff]  ;;  %2329 = vmatprep.subr.bf16.mxu0 %v2584_v21  ;;  %2281 = vmatprep.subr.bf16.mxu1 %v2584_v21 }
  0x10   :  { %v26_v29 = vld [vmem:[%s3162_s0 + $0x58] sm:$0xff]  ;;  %v25_v30 = vld [vmem:[%s3162_s0 + $0x50] sm:$0xff]  ;;  %2331 = vmatpush3.bf16.msra.mxu0 %v2584_v21  ;;  %2283 = vmatpush3.bf16.msra.mxu1 %v2584_v21  ;;  %v245_v33 = vand.u32 4294901760, %v2593_v25  ;;  %v248_v35 = vand.u32 4294901760, %v2602_v28  ;;  %v28_v38 = vld [vmem:[%s3162_s0 + $0x68] sm:$0xff]  ;;  %v2658_v47 = vsub.f32 %v159_v13, %v233_v18  ;;  %v2660_v48 = vsub.f32 %v160_v14, %v236_v19 }
  0x11   :  { %v502_v31 = vand.u32 4294901760, %v2595_v26  ;;  %v509_v32 = vand.u32 4294901760, %v2597_v27  ;;  %2333 = vmatprep.subr.bf16.mxu0 %v2587_v23  ;;  %2285 = vmatprep.subr.bf16.mxu1 %v2587_v23  ;;  %v2623_v34 = vpack.c.bf16 %v242_v24, %v239_v22  ;;  %v27_v39 = vld [vmem:[%s3162_s0 + $0x60] sm:$0xff]  ;;  %v30_v43 = vld [vmem:[%s3162_s0 + $0x78] sm:$0xff]  ;;  %v29_v44 = vld [vmem:[%s3162_s0 + $0x70] sm:$0xff]  ;;  %v529_v61 = vsub.f32 %v2571_v15, %v239_v22 }
  0x12   :  { %65 = vperm.xlu1 %2482, %v24_v16   ;;  %62 = vperm.xlu0 %2481, %v23_v17   ;;  %v2642_v40 = vpack.c.bf16 %v248_v35, %v245_v33  ;;  %v32_v49 = vld [vmem:[%s3162_s0 + $0x88] sm:$0xff]  ;;  %v31_v50 = vld [vmem:[%s3162_s0 + $0x80] sm:$0xff]  ;;  %v516_v51 = vand.u32 4294901760, %v2658_v47  ;;  %v523_v52 = vand.u32 4294901760, %v2660_v48  ;;  %v34_v56 = vld [vmem:[%s3162_s0 + $0x98] sm:$0xff]  ;;  %v536_v62 = vsub.f32 %v2582_v20, %v242_v24 }
  0x13   :  { %v503_v36 = vsub.f32 %v2595_v26, %v502_v31  ;;  %v510_v37 = vsub.f32 %v2597_v27, %v509_v32  ;;  %v2652_v45 = vpack.c.bf16 %v509_v32, %v502_v31  ;;  %v33_v57 = vld [vmem:[%s3162_s0 + $0x90] sm:$0xff]  ;;  %v1581_v63 = vld [vmem:[%s3163_s1 + $0x8] sm:$0xff]  ;;  %v1580_v0 = vld [vmem:[%s3163_s1] sm:$0xff]  ;;  %v530_v1 = vand.u32 4294901760, %v529_v61 }
  0x14   :  { %2335 = vmatpush3.bf16.msra.mxu0 %v2587_v23  ;;  %2287 = vmatpush3.bf16.msra.mxu1 %v2587_v23  ;;  %v517_v53 = vsub.f32 %v2658_v47, %v516_v51  ;;  %v524_v54 = vsub.f32 %v2660_v48, %v523_v52  ;;  %v2676_v55 = vpack.c.bf16 %v523_v52, %v516_v51  ;;  %v537_v2 = vand.u32 4294901760, %v536_v62  ;;  %v1583_v6 = vld [vmem:[%s3163_s1 + $0x18] sm:$0xff]  ;;  %v1582_v7 = vld [vmem:[%s3163_s1 + $0x10] sm:$0xff]  ;;  %v1585_v15 = vld [vmem:[%s3163_s1 + $0x28] sm:$0xff] }
  0x15   :  { %2337 = vmatprep.subr.bf16.mxu0 %v2623_v34  ;;  %2289 = vmatprep.subr.bf16.mxu1 %v2623_v34  ;;  %v504_v41 = vand.u32 4294901760, %v503_v36  ;;  %v511_v42 = vand.u32 4294901760, %v510_v37  ;;  %v531_v3 = vsub.f32 %v529_v61, %v530_v1  ;;  %v543_v10 = vsub.f32 %v2593_v25, %v245_v33  ;;  %v1584_v16 = vld [vmem:[%s3163_s1 + $0x20] sm:$0xff]  ;;  %v1587_v24 = vld [vmem:[%s3163_s1 + $0x38] sm:$0xff]  ;;  %v1586_v25 = vld [vmem:[%s3163_s1 + $0x30] sm:$0xff] }
  0x16   :  { %71 = vperm.xlu1 %2482, %v26_v29   ;;  %68 = vperm.xlu0 %2481, %v25_v30   ;;  %v518_v58 = vand.u32 4294901760, %v517_v53  ;;  %v525_v59 = vand.u32 4294901760, %v524_v54  ;;  %v538_v4 = vsub.f32 %v536_v62, %v537_v2  ;;  %v2698_v5 = vpack.c.bf16 %v537_v2, %v530_v1  ;;  %v1589_v30 = vld [vmem:[%s3163_s1 + $0x48] sm:$0xff]  ;;  %v1588_v31 = vld [vmem:[%s3163_s1 + $0x40] sm:$0xff]  ;;  %v1591_v32 = vld [vmem:[%s3163_s1 + $0x58] sm:$0xff] }
  0x17   :  { %v2656_v46 = vpack.c.bf16 %v511_v42, %v504_v41  ;;  %v532_v8 = vand.u32 4294901760, %v531_v3  ;;  %v550_v11 = vsub.f32 %v2602_v28, %v248_v35  ;;  %v544_v13 = vand.u32 4294901760, %v543_v10  ;;  %v1590_v33 = vld [vmem:[%s3163_s1 + $0x50] sm:$0xff]  ;;  %v1595_v36 = vld [vmem:[%s3163_s1 + $0x78] sm:$0xff] }
  0x18   :  { %2339 = vmatpush3.bf16.msra.mxu0 %v2623_v34  ;;  %2291 = vmatpush3.bf16.msra.mxu1 %v2623_v34  ;;  %v2684_v60 = vpack.c.bf16 %v525_v59, %v518_v58  ;;  %v539_v9 = vand.u32 4294901760, %v538_v4  ;;  %v2732_v29 = vpack.c.bf16 %v2597_v27, %v2595_v26  ;;  %v1593_v26 = vld [vmem:[%s3163_s1 + $0x68] sm:$0xff]  ;;  %v1592_v27 = vld [vmem:[%s3163_s1 + $0x60] sm:$0xff]  ;;  %v2754_v35 = vpack.c.bf16 %v2660_v48, %v2658_v47  ;;  %v1594_v37 = vld [vmem:[%s3163_s1 + $0x70] sm:$0xff] }
  0x19   :  { %2341 = vmatprep.subr.bf16.mxu0 %v2642_v40  ;;  %2293 = vmatprep.subr.bf16.mxu1 %v2642_v40  ;;  %v551_v14 = vand.u32 4294901760, %v550_v11  ;;  %v545_v17 = vsub.f32 %v543_v10, %v544_v13  ;;  %v2768_v41 = vpack.c.bf16 %v536_v62, %v529_v61  ;;  %v1599_v42 = vld [vmem:[%s3163_s1 + $0x98] sm:$0xff]  ;;  %v35_v47 = vlaneseq }
  0x1a   :  { %77 = vperm.xlu1 %2482, %v28_v38   ;;  %74 = vperm.xlu0 %2481, %v27_v39   ;;  %v2712_v12 = vpack.c.bf16 %v539_v9, %v532_v8  ;;  %v1597_v38 = vld [vmem:[%s3163_s1 + $0x88] sm:$0xff]  ;;  %v1596_v39 = vld [vmem:[%s3163_s1 + $0x80] sm:$0xff]  ;;  %vm165_vm0 = vcmask 523264   ;;  %v2508_v51 = vmov 0.0  }
  0x1b   :  { %v552_v18 = vsub.f32 %v550_v11, %v551_v14  ;;  %v2720_v19 = vpack.c.bf16 %v551_v14, %v544_v13  ;;  %v546_v20 = vand.u32 4294901760, %v545_v17  ;;  %v2778_v48 = vand.u32 127, %v35_v47 }
  0x1c   :  { %2343 = vmatpush3.bf16.msra.mxu0 %v2642_v40  ;;  %2295 = vmatpush3.bf16.msra.mxu1 %v2642_v40 }
  0x1d   :  { %2297 = vmatprep.subr.bf16.mxu1 %v2656_v46  ;;  %2345 = vmatprep.subr.bf16.mxu0 %v2652_v45  ;;  %v553_v22 = vand.u32 4294901760, %v552_v18 }
  0x1e   :  { %83 = vperm.xlu1 %2482, %v30_v43   ;;  %80 = vperm.xlu0 %2481, %v29_v44   ;;  %v1598_v43 = vld [vmem:[%s3163_s1 + $0x90] sm:$0xff]  ;;  %v2776_v44 = vpack.c.bf16 %v550_v11, %v543_v10  ;;  %s2509_s1 = smov [#allocation2]  }
  0x1f   :  { %v2728_v28 = vpack.c.bf16 %v553_v22, %v546_v20  ;;  %s1745_s23 = sshll.u32 %s2509_s1, 4  ;;  %s1746_s23 = int_to_ptr.vmem [resolvable:$true] %s1745_s23 }
  0x20   :  { %s2483_s24 = scalar_lea.vmem %s1746_s23, 2560  ;;  %p2488_p1 = scmp.lt.s32.totalorder %s1746_s23, %s1746_s23 }
  0x21   :  { %p2484_p0 = scmp.ne.s32.totalorder %s1746_s23, %s2483_s24  ;;  %p2489_p2 = scmp.lt.s32.totalorder %s2483_s24, %s2483_s24 }
  0x22   :  { %89 = vperm.xlu1 %2482, %v32_v49   ;;  %86 = vperm.xlu0 %2481, %v31_v50  }
  0x23   :  { %p2490_p3 = por %p2489_p2, %p2488_p1 }
  0x25   :  { %p2491_p4 = pnand %p2490_p3, %p2484_p0 }
  0x26   :  { %95 = vperm.xlu1 %2482, %v34_v56   ;;  %92 = vperm.xlu0 %2481, %v33_v57  }
  0x2a   :  { %1607 = vperm.xlu1 %2482, %v1581_v63   ;;  %1602 = vperm.xlu0 %2481, %v1580_v0  }
  0x2e   :  { %1617 = vperm.xlu1 %2482, %v1583_v6   ;;  %1612 = vperm.xlu0 %2481, %v1582_v7  }
  0x32   :  { %1627 = vperm.xlu1 %2482, %v1585_v15   ;;  %1622 = vperm.xlu0 %2481, %v1584_v16  }
  0x36   :  { %1637 = vperm.xlu1 %2482, %v1587_v24   ;;  %1632 = vperm.xlu0 %2481, %v1586_v25  }
  0x3a   :  { %1647 = vperm.xlu1 %2482, %v1589_v30   ;;  %1642 = vperm.xlu0 %2481, %v1588_v31  }
  0x3e   :  { %1657 = vperm.xlu1 %2482, %v1591_v32   ;;  %1652 = vperm.xlu0 %2481, %v1590_v33  }
  0x42   :  { %1667 = vperm.xlu1 %2482, %v1593_v26   ;;  %1662 = vperm.xlu0 %2481, %v1592_v27  }
  0x46   :  { %1677 = vperm.xlu1 %2482, %v1595_v36   ;;  %1672 = vperm.xlu0 %2481, %v1594_v37  }
  0x4a   :  { %1687 = vperm.xlu1 %2482, %v1597_v38   ;;  %1682 = vperm.xlu0 %2481, %v1596_v39  }
  0x4e   :  { %1697 = vperm.xlu1 %2482, %v1599_v42   ;;  %1692 = vperm.xlu0 %2481, %v1598_v43  }
  0x81   :  { %v45_v49 = vpop.permute.xlu1 %44  ;;  %v39_v50 = vpop.permute.xlu0 %38 }
  0x82   :  { %vm99_vm1 = vcmp.eq.s32.totalorder %v45_v49, %v2778_v48  ;;  %vm97_vm2 = vcmp.eq.s32.totalorder %v39_v50, %v2778_v48 }
  0x83   :  { %v2783_v52 = vsel %vm99_vm1, 1.0, %v2508_v51  ;;  %v2786_v53 = vsel %vm97_vm2, 1.0, %v2508_v51 }
  0x84   :  { %v173_v54 = vsel %vm165_vm0, %v2783_v52, 0  ;;  %v167_v56 = vsel %vm165_vm0, %v2786_v53, 0 }
  0x85   :  { %v2792_v57 = vsub.f32 %v173_v54, %v173_v54  ;;  %v2794_v58 = vsub.f32 %v167_v56, %v167_v56  ;;  %v48_v59 = vpop.permute.xlu1 %47  ;;  %v42_v61 = vpop.permute.xlu0 %41 }
  0x86   :  { %vm100_vm3 = vcmp.eq.s32.totalorder %v48_v59, %v2778_v48  ;;  %vm98_vm4 = vcmp.eq.s32.totalorder %v42_v61, %v2778_v48 }
  0x87   :  { %v2799_v62 = vsel %vm100_vm3, 1.0, %v2508_v51  ;;  %v2802_v63 = vsel %vm98_vm4, 1.0, %v2508_v51  ;;  %v301_v0 = vand.u32 4294901760, %v2794_v58  ;;  %v321_v3 = vand.u32 4294901760, %v2792_v57 }
  0x88   :  { %v176_v1 = vsel %vm165_vm0, %v2799_v62, 0  ;;  %v170_v2 = vsel %vm165_vm0, %v2802_v63, 0 }
  0x89   :  { %v2810_v4 = vsub.f32 %v176_v1, %v176_v1  ;;  %v2812_v6 = vsub.f32 %v170_v2, %v170_v2  ;;  %v54_v7 = vpop.permute.xlu1 %53  ;;  %2158 = vmatprep.mubr.f32.mxu0 %v301_v0  ;;  %v51_v8 = vpop.permute.xlu0 %50  ;;  %v302_v9 = vsub.f32 %v2794_v58, %v301_v0  ;;  %v322_v18 = vsub.f32 %v2792_v57, %v321_v3 }
  0x8a   :  { %vm102_vm5 = vcmp.eq.s32.totalorder %v54_v7, %v2778_v48  ;;  %vm101_vm6 = vcmp.eq.s32.totalorder %v51_v8, %v2778_v48 }
  0x8b   :  { %v2818_v10 = vsel %vm102_vm5, 1.0, %v2508_v51  ;;  %v2821_v11 = vsel %vm101_vm6, 1.0, %v2508_v51  ;;  %v303_v13 = vand.u32 4294901760, %v302_v9  ;;  %v311_v14 = vand.u32 4294901760, %v2812_v6 }
  0x8c   :  { %v182_v15 = vsel %vm165_vm0, %v2818_v10, 0  ;;  %v179_v16 = vsel %vm165_vm0, %v2821_v11, 0  ;;  %v331_v17 = vand.u32 4294901760, %v2810_v4 }
  0x8d   :  { %v2830_v20 = vsub.f32 %v182_v15, %v182_v15  ;;  %v2832_v22 = vsub.f32 %v179_v16, %v179_v16  ;;  %v60_v24 = vpop.permute.xlu1 %59  ;;  %2020 = vmatprep.mubr.f32.mxu1 %v303_v13  ;;  %2159 = vmatmul.mubr.f32.vlgmr.msra.gmra.mrb[0].mxu0 %v311_v14  ;;  %v57_v25 = vpop.permute.xlu0 %56  ;;  %v312_v30 = vsub.f32 %v2812_v6, %v311_v14 }
  0x8e   :  { %vm104_vm7 = vcmp.eq.s32.totalorder %v60_v24, %v2778_v48  ;;  %vm103_vm8 = vcmp.eq.s32.totalorder %v57_v25, %v2778_v48  ;;  %2161 = vmatprep.mubr.f32.mxu0 %v321_v3  ;;  %2347 = vmatpush3.bf16.msra.mxu0 %v2652_v45  ;;  %v332_v31 = vsub.f32 %v2810_v4, %v331_v17  ;;  %v323_v45 = vand.u32 4294901760, %v322_v18 }
  0x8f   :  { %v2840_v32 = vsel %vm104_vm7, 1.0, %v2508_v51  ;;  %v2843_v33 = vsel %vm103_vm8, 1.0, %v2508_v51  ;;  %v313_v26 = vand.u32 4294901760, %v312_v30  ;;  %v341_v27 = vand.u32 4294901760, %v2832_v22  ;;  %2349 = vmatprep.subr.bf16.mxu0 %v2676_v55 }
  0x90   :  { %v188_v36 = vsel %vm165_vm0, %v2840_v32, 0  ;;  %v185_v37 = vsel %vm165_vm0, %v2843_v33, 0  ;;  %v351_v38 = vand.u32 4294901760, %v2830_v20  ;;  %v333_v50 = vand.u32 4294901760, %v332_v31 }
  0x91   :  { %v2852_v39 = vsub.f32 %v188_v36, %v188_v36  ;;  %v2854_v42 = vsub.f32 %v185_v37, %v185_v37  ;;  %v66_v43 = vpop.permute.xlu1 %65  ;;  %2021 = vmatmul.mubr.f32.vlgmr.msra.gmra.mrb[0].mxu1 %v313_v26  ;;  %2162 = vmatmul.mubr.f32.gmra.mrb[2].mxu0 %v331_v17  ;;  %v63_v47 = vpop.permute.xlu0 %62  ;;  %v342_v49 = vsub.f32 %v2832_v22, %v341_v27 }
  0x92   :  { %vm106_vm9 = vcmp.eq.s32.totalorder %v66_v43, %v2778_v48  ;;  %2299 = vmatpush3.bf16.msra.mxu1 %v2656_v46  ;;  %vm105_vm10 = vcmp.eq.s32.totalorder %v63_v47, %v2778_v48  ;;  %2023 = vmatprep.mubr.f32.mxu1 %v323_v45  ;;  %v352_v54 = vsub.f32 %v2830_v20, %v351_v38 }
  0x93   :  { %v2862_v56 = vsel %vm106_vm9, 1.0, %v2508_v51  ;;  %v2865_v59 = vsel %vm105_vm10, 1.0, %v2508_v51  ;;  %2164 = vmatprep.mubr.f32.mxu0 %v341_v27  ;;  %v343_v61 = vand.u32 4294901760, %v342_v49  ;;  %v361_v0 = vand.u32 4294901760, %v2854_v42  ;;  %2301 = vmatprep.subr.bf16.mxu1 %v2684_v60 }
  0x94   :  { %v194_v46 = vsel %vm165_vm0, %v2862_v56, 0  ;;  %v191_v1 = vsel %vm165_vm0, %v2865_v59, 0  ;;  %v371_v2 = vand.u32 4294901760, %v2852_v39  ;;  %2351 = vmatpush3.bf16.msra.mxu0 %v2676_v55  ;;  %v353_v14 = vand.u32 4294901760, %v352_v54 }
  0x95   :  { %v2875_v3 = vsub.f32 %v194_v46, %v194_v46  ;;  %v2877_v7 = vsub.f32 %v191_v1, %v191_v1  ;;  %v72_v8 = vpop.permute.xlu1 %71  ;;  %2024 = vmatmul.mubr.f32.gmra.mrb[2].mxu1 %v333_v50  ;;  %2165 = vmatmul.mubr.f32.gmra.mrb[4].mxu0 %v351_v38  ;;  %v69_v9 = vpop.permute.xlu0 %68  ;;  %v362_v13 = vsub.f32 %v2854_v42, %v361_v0 }
  0x96   :  { %vm108_vm11 = vcmp.eq.s32.totalorder %v72_v8, %v2778_v48  ;;  %vm107_vm12 = vcmp.eq.s32.totalorder %v69_v9, %v2778_v48  ;;  %2026 = vmatprep.mubr.f32.mxu1 %v343_v61  ;;  %2167 = vmatprep.mubr.f32.mxu0 %v361_v0  ;;  %v372_v15 = vsub.f32 %v2852_v39, %v371_v2 }
  0x97   :  { %v2884_v55 = vsel %vm108_vm11, 1.0, %v2508_v51  ;;  %v2887_v16 = vsel %vm107_vm12, 1.0, %v2508_v51  ;;  %v363_v17 = vand.u32 4294901760, %v362_v13  ;;  %v381_v18 = vand.u32 4294901760, %v2877_v7  ;;  %2303 = vmatpush3.bf16.msra.mxu1 %v2684_v60  ;;  %2353 = vmatprep.subr.bf16.mxu0 %v2698_v5 }
  0x98   :  { %v200_v24 = vsel %vm165_vm0, %v2884_v55, 0  ;;  %v197_v25 = vsel %vm165_vm0, %v2887_v16, 0  ;;  %v391_v30 = vand.u32 4294901760, %v2875_v3  ;;  %2305 = vmatprep.subr.bf16.mxu1 %v2712_v12  ;;  %2355 = vmatpush3.bf16.msra.mxu0 %v2698_v5  ;;  %v373_v37 = vand.u32 4294901760, %v372_v15 }
  0x99   :  { %v2899_v31 = vsub.f32 %v200_v24, %v200_v24  ;;  %v2901_v26 = vsub.f32 %v197_v25, %v197_v25  ;;  %v78_v27 = vpop.permute.xlu1 %77  ;;  %2027 = vmatmul.mubr.f32.gmra.mrb[4].mxu1 %v353_v14  ;;  %2168 = vmatmul.mubr.f32.gmra.mrb[6].mxu0 %v371_v2  ;;  %v75_v60 = vpop.permute.xlu0 %74  ;;  %v382_v36 = vsub.f32 %v2877_v7, %v381_v18 }
  0x9a   :  { %vm110_vm13 = vcmp.eq.s32.totalorder %v78_v27, %v2778_v48  ;;  %vm109_vm14 = vcmp.eq.s32.totalorder %v75_v60, %v2778_v48  ;;  %2029 = vmatprep.mubr.f32.mxu1 %v363_v17  ;;  %2170 = vmatprep.mubr.f32.mxu0 %v381_v18  ;;  %v392_v45 = vsub.f32 %v2875_v3, %v391_v30 }
  0x9b   :  { %v2908_v5 = vsel %vm110_vm13, 1.0, %v2508_v51  ;;  %v2911_v38 = vsel %vm109_vm14, 1.0, %v2508_v51  ;;  %v383_v43 = vand.u32 4294901760, %v382_v36  ;;  %v401_v47 = vand.u32 4294901760, %v2901_v26  ;;  %2307 = vmatpush3.bf16.msra.mxu1 %v2712_v12  ;;  %2357 = vmatprep.subr.bf16.mxu0 %v2720_v19 }
  0x9c   :  { %v206_v49 = vsel %vm165_vm0, %v2908_v5, 0  ;;  %v203_v50 = vsel %vm165_vm0, %v2911_v38, 0  ;;  %v411_v54 = vand.u32 4294901760, %v2899_v31  ;;  %2309 = vmatprep.subr.bf16.mxu1 %v2728_v28  ;;  %2359 = vmatpush3.bf16.msra.mxu0 %v2720_v19  ;;  %v393_v2 = vand.u32 4294901760, %v392_v45 }
  0x9d   :  { %v2923_v61 = vsub.f32 %v206_v49, %v206_v49  ;;  %v2925_v0 = vsub.f32 %v203_v50, %v203_v50  ;;  %v84_v46 = vpop.permute.xlu1 %83  ;;  %2030 = vmatmul.mubr.f32.gmra.mrb[6].mxu1 %v373_v37  ;;  %2171 = vmatmul.mubr.f32.gmra.mrb[8].mxu0 %v391_v30  ;;  %v81_v12 = vpop.permute.xlu0 %80  ;;  %v402_v1 = vsub.f32 %v2901_v26, %v401_v47 }
  0x9e   :  { %vm112_vm15 = vcmp.eq.s32.totalorder %v84_v46, %v2778_v48  ;;  %vm111_vm1 = vcmp.eq.s32.totalorder %v81_v12, %v2778_v48  ;;  %2032 = vmatprep.mubr.f32.mxu1 %v383_v43  ;;  %2173 = vmatprep.mubr.f32.mxu0 %v401_v47  ;;  %v412_v8 = vsub.f32 %v2899_v31, %v411_v54 }
  0x9f   :  { %v2932_v19 = vsel %vm112_vm15, 1.0, %v2508_v51  ;;  %v2935_v9 = vsel %vm111_vm1, 1.0, %v2508_v51  ;;  %v403_v13 = vand.u32 4294901760, %v402_v1  ;;  %v421_v14 = vand.u32 4294901760, %v2925_v0  ;;  %2311 = vmatpush3.bf16.msra.mxu1 %v2728_v28  ;;  %2361 = vmatprep.subr.bf16.mxu0 %v2584_v21 }
  0xa0   :  { %v212_v15 = vsel %vm165_vm0, %v2932_v19, 0  ;;  %v209_v17 = vsel %vm165_vm0, %v2935_v9, 0  ;;  %v431_v18 = vand.u32 4294901760, %v2923_v61  ;;  %2313 = vmatprep.subr.bf16.mxu1 %v2732_v29  ;;  %v413_v60 = vand.u32 4294901760, %v412_v8 }
  0xa1   :  { %v2946_v24 = vsub.f32 %v212_v15, %v212_v15  ;;  %v2948_v25 = vsub.f32 %v209_v17, %v209_v17  ;;  %v90_v30 = vpop.permute.xlu1 %89  ;;  %2033 = vmatmul.mubr.f32.gmra.mrb[8].mxu1 %v393_v2  ;;  %2174 = vmatmul.mubr.f32.gmra.mrb[10].mxu0 %v411_v54  ;;  %v87_v28 = vpop.permute.xlu0 %86  ;;  %v422_v27 = vsub.f32 %v2925_v0, %v421_v14 }
  0xa2   :  { %vm114_vm2 = vcmp.eq.s32.totalorder %v90_v30, %v2778_v48  ;;  %vm113_vm3 = vcmp.eq.s32.totalorder %v87_v28, %v2778_v48  ;;  %2035 = vmatprep.mubr.f32.mxu1 %v403_v13  ;;  %2176 = vmatprep.mubr.f32.mxu0 %v421_v14  ;;  %v432_v36 = vsub.f32 %v2923_v61, %v431_v18 }
  0xa3   :  { %v2955_v37 = vsel %vm114_vm2, 1.0, %v2508_v51  ;;  %v2958_v45 = vsel %vm113_vm3, 1.0, %v2508_v51  ;;  %v423_v43 = vand.u32 4294901760, %v422_v27  ;;  %v441_v47 = vand.u32 4294901760, %v2948_v25 }
  0xa4   :  { %v218_v49 = vsel %vm165_vm0, %v2955_v37, 0  ;;  %v215_v50 = vsel %vm165_vm0, %v2958_v45, 0  ;;  %v451_v54 = vand.u32 4294901760, %v2946_v24  ;;  %v433_v13 = vand.u32 4294901760, %v432_v36 }
  0xa5   :  { %v2966_v46 = vsub.f32 %v218_v49, %v218_v49  ;;  %v2968_v12 = vsub.f32 %v215_v50, %v215_v50  ;;  %v96_v1 = vpop.permute.xlu1 %95  ;;  %2036 = vmatmul.mubr.f32.gmra.mrb[10].mxu1 %v413_v60  ;;  %2177 = vmatmul.mubr.f32.gmra.mrb[12].mxu0 %v431_v18  ;;  %v93_v2 = vpop.permute.xlu0 %92  ;;  %v442_v8 = vsub.f32 %v2948_v25, %v441_v47 }
  0xa6   :  { %vm116_vm4 = vcmp.eq.s32.totalorder %v96_v1, %v2778_v48  ;;  %vm115_vm5 = vcmp.eq.s32.totalorder %v93_v2, %v2778_v48  ;;  %2038 = vmatprep.mubr.f32.mxu1 %v423_v43  ;;  %2179 = vmatprep.mubr.f32.mxu0 %v441_v47  ;;  %v452_v14 = vsub.f32 %v2946_v24, %v451_v54 }
  0xa7   :  { %v2975_v15 = vsel %vm116_vm4, 1.0, %v2508_v51  ;;  %v2978_v17 = vsel %vm115_vm5, 1.0, %v2508_v51  ;;  %v443_v30 = vand.u32 4294901760, %v442_v8  ;;  %v461_v18 = vand.u32 4294901760, %v2968_v12 }
  0xa8   :  { %v224_v28 = vsel %vm165_vm0, %v2975_v15, 0  ;;  %v221_v48 = vsel %vm165_vm0, %v2978_v17, 0  ;;  %v471_v27 = vand.u32 4294901760, %v2966_v46  ;;  %v453_v43 = vand.u32 4294901760, %v452_v14 }
  0xa9   :  { %v2986_v60 = vsub.f32 %v224_v28, %v224_v28  ;;  %v2988_v36 = vsub.f32 %v221_v48, %v221_v48  ;;  %2039 = vmatmul.mubr.f32.gmra.mrb[12].mxu1 %v433_v13  ;;  %2180 = vmatmul.mubr.f32.gmra.mrb[14].mxu0 %v451_v54  ;;  %v462_v51 = vsub.f32 %v2968_v12, %v461_v18 }
  0xaa   :  { %2041 = vmatprep.mubr.f32.mxu1 %v443_v30  ;;  %2182 = vmatprep.mubr.f32.mxu0 %v461_v18  ;;  %v472_v50 = vsub.f32 %v2966_v46, %v471_v27 }
  0xab   :  { %v463_v47 = vand.u32 4294901760, %v462_v51  ;;  %v481_v49 = vand.u32 4294901760, %v2988_v36  ;;  %v491_v1 = vand.u32 4294901760, %v2986_v60 }
  0xac   :  { %v473_v8 = vand.u32 4294901760, %v472_v50 }
  0xad   :  { %2042 = vmatmul.mubr.f32.gmra.mrb[14].mxu1 %v453_v43  ;;  %2183 = vmatmul.mubr.f32.gmra.mrb[16].mxu0 %v471_v27  ;;  %v482_v2 = vsub.f32 %v2988_v36, %v481_v49  ;;  %v492_v13 = vsub.f32 %v2986_v60, %v491_v1 }
  0xae   :  { %2044 = vmatprep.mubr.f32.mxu1 %v463_v47  ;;  %2185 = vmatprep.mubr.f32.mxu0 %v481_v49 }
  0xaf   :  { %v483_v54 = vand.u32 4294901760, %v482_v2  ;;  %v493_v14 = vand.u32 4294901760, %v492_v13 }
  0xb1   :  { %2045 = vmatmul.mubr.f32.gmra.mrb[16].mxu1 %v473_v8  ;;  %2186 = vmatmul.mubr.f32.gmra.mrb[18].mxu0 %v491_v1 }
  0xb2   :  { %2047 = vmatprep.mubr.f32.mxu1 %v483_v54  ;;  %2204 = vmatprep.mubr.msk.f32.mxu0 %vm165_vm0, %v2786_v53 }
  0xb5   :  { %2048 = vmatmul.mubr.f32.gmra.mrb[18].mxu1 %v493_v14  ;;  %2205 = vmatmul.mubr.msk.f32.vlgmr.msra.gmra.mrb[0].mxu0 %vm165_vm0, %v2802_v63 }
  0xb6   :  { %2066 = vmatprep.mubr.msk.f32.mxu1 %vm165_vm0, %v2786_v53  ;;  %2207 = vmatprep.mubr.msk.f32.mxu0 %vm165_vm0, %v2783_v52 }
  0xb7   :  { %2363 = vmatpush3.bf16.msra.mxu0 %v2584_v21  ;;  %v1608_v21 = vpop.permute.xlu1 %1607 }
  0xb8   :  { %2365 = vmatprep.subr.bf16.mxu0 %v2587_v23 }
  0xb9   :  { %2067 = vmatmul.mubr.msk.f32.vlgmr.msra.gmra.mrb[0].mxu1 %vm165_vm0, %v2802_v63  ;;  %2208 = vmatmul.mubr.msk.f32.gmra.mrb[2].mxu0 %vm165_vm0, %v2799_v62 }
  0xba   :  { %2315 = vmatpush3.bf16.msra.mxu1 %v2732_v29  ;;  %2069 = vmatprep.mubr.msk.f32.mxu1 %vm165_vm0, %v2783_v52 }
  0xbb   :  { %2210 = vmatprep.mubr.msk.f32.mxu0 %vm165_vm0, %v2821_v11  ;;  %2317 = vmatprep.subr.bf16.mxu1 %v2754_v35 }
  0xbc   :  { %2367 = vmatpush3.bf16.msra.mxu0 %v2587_v23  ;;  %v1603_v23 = vpop.permute.xlu0 %1602 }
  0xbd   :  { %2070 = vmatmul.mubr.msk.f32.gmra.mrb[2].mxu1 %vm165_vm0, %v2799_v62  ;;  %2211 = vmatmul.mubr.msk.f32.gmra.mrb[4].mxu0 %vm165_vm0, %v2818_v10 }
  0xbe   :  { %2072 = vmatprep.mubr.msk.f32.mxu1 %vm165_vm0, %v2821_v11  ;;  %2213 = vmatprep.mubr.msk.f32.mxu0 %vm165_vm0, %v2843_v33 }
  0xbf   :  { %2319 = vmatpush3.bf16.msra.mxu1 %v2754_v35  ;;  %2369 = vmatprep.subr.bf16.mxu0 %v2623_v34 }
  0xc0   :  { %2321 = vmatprep.subr.bf16.mxu1 %v2768_v41  ;;  %2371 = vmatpush3.bf16.msra.mxu0 %v2623_v34  ;;  %v1618_v34 = vpop.permute.xlu1 %1617 }
  0xc1   :  { %2073 = vmatmul.mubr.msk.f32.gmra.mrb[4].mxu1 %vm165_vm0, %v2818_v10  ;;  %2214 = vmatmul.mubr.msk.f32.gmra.mrb[6].mxu0 %vm165_vm0, %v2840_v32 }
  0xc2   :  { %2075 = vmatprep.mubr.msk.f32.mxu1 %vm165_vm0, %v2843_v33  ;;  %2216 = vmatprep.mubr.msk.f32.mxu0 %vm165_vm0, %v2865_v59 }
  0xc3   :  { %2323 = vmatpush3.bf16.msra.mxu1 %v2768_v41  ;;  %2373 = vmatprep.subr.bf16.mxu0 %v2642_v40 }
  0xc4   :  { %2325 = vmatprep.subr.bf16.mxu1 %v2776_v44  ;;  %2375 = vmatpush3.bf16.msra.mxu0 %v2642_v40  ;;  %v1613_v40 = vpop.permute.xlu0 %1612  ;;  %v1628_v29 = vpop.permute.xlu1 %1627 }
  0xc5   :  { %2076 = vmatmul.mubr.msk.f32.gmra.mrb[6].mxu1 %vm165_vm0, %v2840_v32  ;;  %2217 = vmatmul.mubr.msk.f32.gmra.mrb[8].mxu0 %vm165_vm0, %v2862_v56 }
  0xc6   :  { %2078 = vmatprep.mubr.msk.f32.mxu1 %vm165_vm0, %v2865_v59  ;;  %2219 = vmatprep.mubr.msk.f32.mxu0 %vm165_vm0, %v2887_v16 }
  0xc7   :  { %2327 = vmatpush3.bf16.msra.mxu1 %v2776_v44 }
  0xc8   :  { %v1623_v35 = vpop.permute.xlu0 %1622  ;;  %v1638_v41 = vpop.permute.xlu1 %1637 }
  0xc9   :  { %2079 = vmatmul.mubr.msk.f32.gmra.mrb[8].mxu1 %vm165_vm0, %v2862_v56  ;;  %2220 = vmatmul.mubr.msk.f32.gmra.mrb[10].mxu0 %vm165_vm0, %v2884_v55 }
  0xca   :  { %2081 = vmatprep.mubr.msk.f32.mxu1 %vm165_vm0, %v2887_v16  ;;  %2222 = vmatprep.mubr.msk.f32.mxu0 %vm165_vm0, %v2911_v38 }
  0xcc   :  { %v1633_v44 = vpop.permute.xlu0 %1632 }
  0xcd   :  { %2082 = vmatmul.mubr.msk.f32.gmra.mrb[10].mxu1 %vm165_vm0, %v2884_v55  ;;  %2223 = vmatmul.mubr.msk.f32.gmra.mrb[12].mxu0 %vm165_vm0, %v2908_v5 }
  0xce   :  { %2084 = vmatprep.mubr.msk.f32.mxu1 %vm165_vm0, %v2911_v38  ;;  %2225 = vmatprep.mubr.msk.f32.mxu0 %vm165_vm0, %v2935_v9 }
  0xd1   :  { %2085 = vmatmul.mubr.msk.f32.gmra.mrb[12].mxu1 %vm165_vm0, %v2908_v5  ;;  %2226 = vmatmul.mubr.msk.f32.gmra.mrb[14].mxu0 %vm165_vm0, %v2932_v19 }
  0xd2   :  { %2087 = vmatprep.mubr.msk.f32.mxu1 %vm165_vm0, %v2935_v9  ;;  %2228 = vmatprep.mubr.msk.f32.mxu0 %vm165_vm0, %v2958_v45 }
  0xd5   :  { %2088 = vmatmul.mubr.msk.f32.gmra.mrb[14].mxu1 %vm165_vm0, %v2932_v19  ;;  %2229 = vmatmul.mubr.msk.f32.gmra.mrb[16].mxu0 %vm165_vm0, %v2955_v37 }
  0xd6   :  { %2090 = vmatprep.mubr.msk.f32.mxu1 %vm165_vm0, %v2958_v45  ;;  %2231 = vmatprep.mubr.msk.f32.mxu0 %vm165_vm0, %v2978_v17 }
  0xd9   :  { %2091 = vmatmul.mubr.msk.f32.gmra.mrb[16].mxu1 %vm165_vm0, %v2955_v37  ;;  %2232 = vmatmul.mubr.msk.f32.gmra.mrb[18].mxu0 %vm165_vm0, %v2975_v15 }
  0xda   :  { %2093 = vmatprep.mubr.msk.f32.mxu1 %vm165_vm0, %v2978_v17  ;;  %2250 = vmatprep.mubr.msk.f32.mxu0 %vm165_vm0, %v2786_v53 }
  0xdd   :  { %2094 = vmatmul.mubr.msk.f32.gmra.mrb[18].mxu1 %vm165_vm0, %v2975_v15  ;;  %2251 = vmatmul.mubr.msk.f32.vlgmr.msra.gmra.mrb[0].mxu0 %vm165_vm0, %v2802_v63 }
  0xde   :  { %2112 = vmatprep.mubr.f32.mxu1 %v2794_v58  ;;  %2253 = vmatprep.mubr.msk.f32.mxu0 %vm165_vm0, %v2783_v52  ;;  %v1643_v58 = vpop.permute.xlu0 %1642 }
  0xe1   :  { %2113 = vmatmul.mubr.f32.vlgmr.msra.gmra.mrb[0].mxu1 %v2812_v6  ;;  %2254 = vmatmul.mubr.msk.f32.gmra.mrb[2].mxu0 %vm165_vm0, %v2799_v62 }
  0xe2   :  { %2115 = vmatprep.mubr.f32.mxu1 %v2792_v57  ;;  %2256 = vmatprep.mubr.msk.f32.mxu0 %vm165_vm0, %v2821_v11  ;;  %v1648_v57 = vpop.permute.xlu1 %1647 }
  0xe5   :  { %2116 = vmatmul.mubr.f32.gmra.mrb[2].mxu1 %v2810_v4  ;;  %2257 = vmatmul.mubr.msk.f32.gmra.mrb[4].mxu0 %vm165_vm0, %v2818_v10 }
  0xe6   :  { %2118 = vmatprep.mubr.f32.mxu1 %v2832_v22  ;;  %2259 = vmatprep.mubr.msk.f32.mxu0 %vm165_vm0, %v2843_v33 }
  0xe9   :  { %2119 = vmatmul.mubr.f32.gmra.mrb[4].mxu1 %v2830_v20  ;;  %2260 = vmatmul.mubr.msk.f32.gmra.mrb[6].mxu0 %vm165_vm0, %v2840_v32 }
  0xea   :  { %2121 = vmatprep.mubr.f32.mxu1 %v2854_v42  ;;  %2262 = vmatprep.mubr.msk.f32.mxu0 %vm165_vm0, %v2865_v59 }
  0xed   :  { %2122 = vmatmul.mubr.f32.gmra.mrb[6].mxu1 %v2852_v39  ;;  %2263 = vmatmul.mubr.msk.f32.gmra.mrb[8].mxu0 %vm165_vm0, %v2862_v56 }
  0xee   :  { %2124 = vmatprep.mubr.f32.mxu1 %v2877_v7  ;;  %2265 = vmatprep.mubr.msk.f32.mxu0 %vm165_vm0, %v2887_v16  ;;  %v1653_v7 = vpop.permute.xlu0 %1652 }
  0xf1   :  { %2125 = vmatmul.mubr.f32.gmra.mrb[8].mxu1 %v2875_v3  ;;  %2266 = vmatmul.mubr.msk.f32.gmra.mrb[10].mxu0 %vm165_vm0, %v2884_v55  ;;  %v1658_v3 = vpop.permute.xlu1 %1657 }
  0xf2   :  { %2127 = vmatprep.mubr.f32.mxu1 %v2901_v26  ;;  %2268 = vmatprep.mubr.msk.f32.mxu0 %vm165_vm0, %v2911_v38 }
  0xf5   :  { %2128 = vmatmul.mubr.f32.gmra.mrb[10].mxu1 %v2899_v31  ;;  %2269 = vmatmul.mubr.msk.f32.gmra.mrb[12].mxu0 %vm165_vm0, %v2908_v5 }
  0xf6   :  { %2130 = vmatprep.mubr.f32.mxu1 %v2925_v0  ;;  %2271 = vmatprep.mubr.msk.f32.mxu0 %vm165_vm0, %v2935_v9 }
  0xf9   :  { %2131 = vmatmul.mubr.f32.gmra.mrb[12].mxu1 %v2923_v61  ;;  %2272 = vmatmul.mubr.msk.f32.gmra.mrb[14].mxu0 %vm165_vm0, %v2932_v19 }
  0xfa   :  { %2133 = vmatprep.mubr.f32.mxu1 %v2948_v25  ;;  %2274 = vmatprep.mubr.msk.f32.mxu0 %vm165_vm0, %v2958_v45 }
  0xfd   :  { %2134 = vmatmul.mubr.f32.gmra.mrb[14].mxu1 %v2946_v24  ;;  %2275 = vmatmul.mubr.msk.f32.gmra.mrb[16].mxu0 %vm165_vm0, %v2955_v37 }
  0xfe   :  { %2136 = vmatprep.mubr.f32.mxu1 %v2968_v12  ;;  %2277 = vmatprep.mubr.msk.f32.mxu0 %vm165_vm0, %v2978_v17  ;;  %v1663_v17 = vpop.permute.xlu0 %1662 }
 0x101   :  { %2137 = vmatmul.mubr.f32.gmra.mrb[16].mxu1 %v2966_v46  ;;  %2278 = vmatmul.mubr.msk.f32.gmra.mrb[18].mxu0 %vm165_vm0, %v2975_v15  ;;  %v1668_v15 = vpop.permute.xlu1 %1667 }
 0x102   :  { %2139 = vmatprep.mubr.f32.mxu1 %v2988_v36  ;;  %v1673_v14 = vpop.permute.xlu0 %1672 }
 0x105   :  { %2140 = vmatmul.mubr.f32.gmra.mrb[18].mxu1 %v2986_v60  ;;  %v1678_v13 = vpop.permute.xlu1 %1677 }
 0x1b0   :  { %v2252_v52 = vpop.f32.mrb[0].mxu0 }
 0x1b1   :  { %v1462_v53 = vpop.f32.mrb[1].mxu0 }
 0x1b4   :  { %v2114_v62 = vpop.f32.mrb[0].mxu1  ;;  %v2255_v63 = vpop.f32.mrb[2].mxu0 }
 0x1b5   :  { %v2376_v4 = vadd.f32 %v2252_v52, %v2114_v62  ;;  %v808_v6 = vpop.f32.mrb[1].mxu1  ;;  %v1474_v10 = vpop.f32.mrb[3].mxu0 }
 0x1b6   :  { %v2377_v11 = vadd.f32 %v1462_v53, %v808_v6 }
 0x1b7   :  { %v1701_v20 = vmul.f32 %v2376_v4, %v1608_v21 }
 0x1b8   :  { %v1700_v22 = vmul.f32 %v2377_v11, %v1603_v23  ;;  %v2117_v32 = vpop.f32.mrb[2].mxu1  ;;  %v2258_v33 = vpop.f32.mrb[4].mxu0 }
 0x1b9   :  { %1721 = vst [vmem:[#allocation2 + $0x8] sm:$0xff] %v1701_v20  ;;  %v2378_v39 = vadd.f32 %v2255_v63, %v2117_v32  ;;  %v822_v42 = vpop.f32.mrb[3].mxu1  ;;  %v1486_v56 = vpop.f32.mrb[5].mxu0 }
 0x1ba   :  { %1720 = vst [vmem:[#allocation2] sm:$0xff] %v1700_v22  ;;  %v2379_v59 = vadd.f32 %v1474_v10, %v822_v42  ;;  %v1688_v10 = vpop.permute.xlu1 %1687  ;;  %v1683_v11 = vpop.permute.xlu0 %1682 }
 0x1bb   :  { %v1703_v55 = vmul.f32 %v2378_v39, %v1618_v34 }
 0x1bc   :  { %v1702_v16 = vmul.f32 %v2379_v59, %v1613_v40  ;;  %v2120_v31 = vpop.f32.mrb[4].mxu1  ;;  %v2261_v26 = vpop.f32.mrb[6].mxu0 }
 0x1bd   :  { %1723 = vst [vmem:[#allocation2 + $0x18] sm:$0xff] %v1703_v55  ;;  %v2380_v5 = vadd.f32 %v2258_v33, %v2120_v31  ;;  %v836_v38 = vpop.f32.mrb[5].mxu1  ;;  %v1498_v61 = vpop.f32.mrb[7].mxu0 }
 0x1be   :  { %1722 = vst [vmem:[#allocation2 + $0x10] sm:$0xff] %v1702_v16  ;;  %v2381_v0 = vadd.f32 %v1486_v56, %v836_v38  ;;  %v1693_v38 = vpop.permute.xlu0 %1692 }
 0x1bf   :  { %v1705_v19 = vmul.f32 %v2380_v5, %v1628_v29 }
 0x1c0   :  { %v1704_v9 = vmul.f32 %v2381_v0, %v1623_v35  ;;  %v2123_v24 = vpop.f32.mrb[6].mxu1  ;;  %v2264_v25 = vpop.f32.mrb[8].mxu0 }
 0x1c1   :  { %1725 = vst [vmem:[#allocation2 + $0x28] sm:$0xff] %v1705_v19  ;;  %v2382_v37 = vadd.f32 %v2261_v26, %v2123_v24  ;;  %v850_v45 = vpop.f32.mrb[7].mxu1  ;;  %v1510_v46 = vpop.f32.mrb[9].mxu0 }
 0x1c2   :  { %1724 = vst [vmem:[#allocation2 + $0x20] sm:$0xff] %v1704_v9  ;;  %v2383_v12 = vadd.f32 %v1498_v61, %v850_v45  ;;  %v1698_v26 = vpop.permute.xlu1 %1697 }
 0x1c3   :  { %v1707_v30 = vmul.f32 %v2382_v37, %v1638_v41 }
 0x1c4   :  { %v1706_v18 = vmul.f32 %v2383_v12, %v1633_v44  ;;  %v2126_v28 = vpop.f32.mrb[8].mxu1  ;;  %v2267_v48 = vpop.f32.mrb[10].mxu0 }
 0x1c5   :  { %1727 = vst [vmem:[#allocation2 + $0x38] sm:$0xff] %v1707_v30  ;;  %v2384_v27 = vadd.f32 %v2264_v25, %v2126_v28  ;;  %v864_v60 = vpop.f32.mrb[9].mxu1  ;;  %v1522_v36 = vpop.f32.mrb[11].mxu0 }
 0x1c6   :  { %1726 = vst [vmem:[#allocation2 + $0x30] sm:$0xff] %v1706_v18  ;;  %v2385_v51 = vadd.f32 %v1510_v46, %v864_v60 }
 0x1c7   :  { %v1709_v43 = vmul.f32 %v2384_v27, %v1648_v57 }
 0x1c8   :  { %v1708_v47 = vmul.f32 %v2385_v51, %v1643_v58  ;;  %v2129_v49 = vpop.f32.mrb[10].mxu1  ;;  %v2270_v50 = vpop.f32.mrb[12].mxu0 }
 0x1c9   :  { %1729 = vst [vmem:[#allocation2 + $0x48] sm:$0xff] %v1709_v43  ;;  %v2386_v1 = vadd.f32 %v2267_v48, %v2129_v49  ;;  %v878_v2 = vpop.f32.mrb[11].mxu1  ;;  %v1534_v8 = vpop.f32.mrb[13].mxu0 }
 0x1ca   :  { %1728 = vst [vmem:[#allocation2 + $0x40] sm:$0xff] %v1708_v47  ;;  %v2387_v54 = vadd.f32 %v1522_v36, %v878_v2 }
 0x1cb   :  { %v1711_v21 = vmul.f32 %v2386_v1, %v1658_v3 }
 0x1cc   :  { %v1710_v23 = vmul.f32 %v2387_v54, %v1653_v7  ;;  %v2132_v34 = vpop.f32.mrb[12].mxu1  ;;  %v2273_v40 = vpop.f32.mrb[14].mxu0 }
 0x1cd   :  { %1731 = vst [vmem:[#allocation2 + $0x58] sm:$0xff] %v1711_v21  ;;  %v2388_v29 = vadd.f32 %v2270_v50, %v2132_v34  ;;  %v892_v35 = vpop.f32.mrb[13].mxu1  ;;  %v1546_v41 = vpop.f32.mrb[15].mxu0 }
 0x1ce   :  { %1730 = vst [vmem:[#allocation2 + $0x50] sm:$0xff] %v1710_v23  ;;  %v2389_v44 = vadd.f32 %v1534_v8, %v892_v35 }
 0x1cf   :  { %v1713_v52 = vmul.f32 %v2388_v29, %v1668_v15 }
 0x1d0   :  { %v1712_v53 = vmul.f32 %v2389_v44, %v1663_v17  ;;  %v2135_v57 = vpop.f32.mrb[14].mxu1  ;;  %v2276_v58 = vpop.f32.mrb[16].mxu0 }
 0x1d1   :  { %1733 = vst [vmem:[#allocation2 + $0x68] sm:$0xff] %v1713_v52  ;;  %v2390_v62 = vadd.f32 %v2273_v40, %v2135_v57  ;;  %v906_v63 = vpop.f32.mrb[15].mxu1  ;;  %v1558_v4 = vpop.f32.mrb[17].mxu0 }
 0x1d2   :  { %1732 = vst [vmem:[#allocation2 + $0x60] sm:$0xff] %v1712_v53  ;;  %v2391_v6 = vadd.f32 %v1546_v41, %v906_v63 }
 0x1d3   :  { %v1715_v20 = vmul.f32 %v2390_v62, %v1678_v13 }
 0x1d4   :  { %v1714_v22 = vmul.f32 %v2391_v6, %v1673_v14  ;;  %v2138_v32 = vpop.f32.mrb[16].mxu1  ;;  %v2279_v33 = vpop.f32.mrb[18].mxu0 }
 0x1d5   :  { %1735 = vst [vmem:[#allocation2 + $0x78] sm:$0xff] %v1715_v20  ;;  %v2392_v39 = vadd.f32 %v2276_v58, %v2138_v32  ;;  %v920_v42 = vpop.f32.mrb[17].mxu1  ;;  %v1570_v56 = vpop.f32.mrb[19].mxu0 }
 0x1d6   :  { %1734 = vst [vmem:[#allocation2 + $0x70] sm:$0xff] %v1714_v22  ;;  %v2393_v59 = vadd.f32 %v1558_v4, %v920_v42 }
 0x1d7   :  { %v1717_v3 = vmul.f32 %v2392_v39, %v1688_v10 }
 0x1d8   :  { %v1716_v7 = vmul.f32 %v2393_v59, %v1683_v11  ;;  %v2141_v55 = vpop.f32.mrb[18].mxu1 }
 0x1d9   :  { %1737 = vst [vmem:[#allocation2 + $0x88] sm:$0xff] %v1717_v3  ;;  %v2394_v16 = vadd.f32 %v2279_v33, %v2141_v55  ;;  %v934_v31 = vpop.f32.mrb[19].mxu1 }
 0x1da   :  { %1736 = vst [vmem:[#allocation2 + $0x80] sm:$0xff] %v1716_v7  ;;  %v2395_v5 = vadd.f32 %v1570_v56, %v934_v31 }
 0x1db   :  { %v1719_v61 = vmul.f32 %v2394_v16, %v1698_v26 }
 0x1dc   :  { %v1718_v0 = vmul.f32 %v2395_v5, %v1693_v38 }
 0x1dd   :  { %1739 = vst [vmem:[#allocation2 + $0x98] sm:$0xff] %v1719_v61 }
 0x1de   :  { %1738 = vst [vmem:[#allocation2 + $0x90] sm:$0xff] %v1718_v0 }
 0x1df   :  { %2494 = shalt.err (!%p2491_p4)
}
 0x1e0   :  { %s2495_s26 = scalar_lea.hbm %s3165_s3, 2560 }
 0x1e1   :  { %p2496_p5 = scmp.ne.s32.totalorder %s3165_s3, %s2495_s26  ;;  %p2499_p6 = scmp.lt.u32.totalorder %s2495_s26, %s3165_s3 }
 0x1e3   :  { %p2501_p7 = pnand %p2499_p6, %p2496_p5 }
 0x1e5   :  { %2504 = shalt.err (!%p2501_p7)
}
 0x1e6   :  { %s2510_s4 = smov 128   ;;  %s2511_s5 = smov 8  }
 0x1e7   :  { %1751 = dma.vmem_to_hbm [thread:$0]  %s1746_s23, 2560, %s3165_s3, [#allocation3], %s2510_s4, %s2510_s4, %s2511_s5  }
 0x1e8   :  { %2505 = dma.done.wait [#allocation3], 2560  }
 0x1e9   :  { %2506 = vsyncadd [#allocation3], 4294964736 }
 0x1ea   :  { %1755 = vsyncpa [#allocation3], 1 }

</bundles_post_ra>
